<compile_context>
chip_gen: v6e
topology: v6e:2x2x1
jax: 0.10.0
libtpu: 0.0.40
codegen_flags: <defaults>
</compile_context>

<pallas_src>
import jax
import jax.numpy as jnp
from jax.experimental import pallas as pl
from jax.experimental.pallas import tpu as pltpu

IN_FEATURES = 10
OUT_FEATURES = 1


def linear_kernel(w_ref, b_ref, x_ref, o_ref):
    # w_ref: [1, IN]        VMEM (resident: same block index every grid step)
    # b_ref: [1, 1]         SMEM scalar
    # x_ref: [TILE_ROWS, IN] VMEM (pipelined batch tile, native [B, 10] layout)
    # o_ref: [TILE_ROWS, 1]  VMEM
    x = x_ref[...].astype(jnp.float32)                  # f32 accumulate (safe for bf16 reuse)
    w = w_ref[...].astype(jnp.float32)                  # [1, IN] -> broadcast over sublanes
    acc = jnp.sum(x * w, axis=-1, keepdims=True)        # VPU mul + lane reduce -> [TILE, 1]
    o_ref[...] = (acc + b_ref[0, 0]).astype(o_ref.dtype)


def _round_up(v, m):
    return ((v + m - 1) // m) * m


def dummy_model_forward(x, weight, bias, *, tile_rows=8192, min_pallas_batch=0):
    """x: [B, 10]; weight: [1, 10] (PyTorch layout); bias: [1] -> [B, 1]."""
    B = x.shape[0]

    # Small-batch fast path: at tiny B the fixed pallas_call cost dominates and
    # XLA's fused matvec is already at the HBM roofline.
    if B < min_pallas_batch:
        return x @ weight.astype(x.dtype).T + bias.astype(x.dtype)

    # Tile the batch (sublane) axis; IN_FEATURES stays on the lane axis.
    # tile_rows is a multiple of 8 (sublane granularity); the ragged tail (when
    # tile_rows does not divide B) is handled by Pallas' masked boundary blocks.
    tile_rows = _round_up(min(tile_rows, _round_up(B, 8)), 8)
    num_tiles = pl.cdiv(B, tile_rows)

    w_row = jnp.asarray(weight, dtype=x.dtype).reshape(OUT_FEATURES, IN_FEATURES)  # [1, IN]
    b_smem = jnp.asarray(bias, dtype=jnp.float32).reshape(1, 1)                    # [1, 1]

    itemsize = x.dtype.itemsize
    cost = pl.CostEstimate(
        flops=2 * B * IN_FEATURES,
        transcendentals=0,
        # Un-padded HBM traffic of the kernel itself (x read + y write + W + b).
        bytes_accessed=(B * IN_FEATURES * itemsize
                        + B * OUT_FEATURES * itemsize
                        + OUT_FEATURES * IN_FEATURES * itemsize
                        + 4),
    )

    out = pl.pallas_call(
        linear_kernel,
        out_shape=jax.ShapeDtypeStruct((B, OUT_FEATURES), x.dtype),
        grid_spec=pltpu.PrefetchScalarGridSpec(
            num_scalar_prefetch=0,
            grid=(num_tiles,),
            in_specs=[
                # Weight row: same block every step -> effectively resident in VMEM.
                pl.BlockSpec((OUT_FEATURES, IN_FEATURES), lambda i: (0, 0)),
                # Bias: scalar in SMEM (no padded VMEM tile, no per-step DMA).
                pl.BlockSpec(memory_space=pltpu.MemorySpace.SMEM),
                # x tile: pipelined over batch rows, contiguous HBM reads.
                pl.BlockSpec((tile_rows, IN_FEATURES), lambda i: (i, 0)),
            ],
            out_specs=pl.BlockSpec((tile_rows, OUT_FEATURES), lambda i: (i, 0)),
        ),
        compiler_params=pltpu.CompilerParams(
            dimension_semantics=("parallel",),   # v7x: shard batch tiles over 2 TCs
            vmem_limit_bytes=32 * 1024 * 1024,   # ~16 MiB actually used at tile_rows=8192
        ),
        cost_estimate=cost,
    )(w_row, b_smem, x)

    return out


if __name__ == "__main__":
    key = jax.random.PRNGKey(0)
    kx, kw, kb = jax.random.split(key, 3)

    B = 64  # small demo batch; min_pallas_batch=0 forces the Pallas path
    x = jax.random.normal(kx, (B, IN_FEATURES), dtype=jnp.float32)
    bound = 1.0 / (IN_FEATURES ** 0.5)
    weight = jax.random.uniform(kw, (OUT_FEATURES, IN_FEATURES),
                                minval=-bound, maxval=bound, dtype=jnp.float32)
    bias = jax.random.uniform(kb, (OUT_FEATURES,),
                              minval=-bound, maxval=bound, dtype=jnp.float32)

    out = dummy_model_forward(x, weight, bias, min_pallas_batch=0)
    jax.block_until_ready(out)

    ref = x @ weight.T + bias
    assert out.shape == (B, OUT_FEATURES)
    assert jnp.allclose(out, ref, atol=1e-5, rtol=1e-5)

    print("KERNEL_OK")
</pallas_src>

<mosaic_0001>
module attributes {stable_mosaic.version = 11 : i64} {
  func.func @linear_kernel(%arg0: i32, %arg1: memref<1x10xf32, #tpu.memory_space<vmem>>, %arg2: memref<1x1xf32, #tpu.memory_space<smem>>, %arg3: memref<64x10xf32, #tpu.memory_space<vmem>>, %arg4: memref<64x1xf32, #tpu.memory_space<vmem>>) attributes {dimension_semantics = [#tpu.dimension_semantics<parallel>], iteration_bounds = array<i64: 1>, scalar_prefetch = 0 : i64, scratch_operands = 0 : i64, tpu.core_type = #tpu.core_type<tc>, window_params = [{pipeline_mode = #tpu.pipeline_mode<synchronous>, transform_indices = @transform_0, window_bounds = array<i64: 1, 10>}, {transform_indices = @transform_1, window_bounds = array<i64: 1, 1>}, {transform_indices = @transform_2, window_bounds = array<i64: 64, 10>}, {transform_indices = @transform_3, window_bounds = array<i64: 64, 1>}]} {
    %c0 = arith.constant 0 : index
    %c0_0 = arith.constant 0 : index
    %0 = vector.load %arg3[%c0, %c0_0] : memref<64x10xf32, #tpu.memory_space<vmem>>, vector<64x10xf32>
    %c0_1 = arith.constant 0 : index
    %c0_2 = arith.constant 0 : index
    %1 = vector.load %arg1[%c0_1, %c0_2] : memref<1x10xf32, #tpu.memory_space<vmem>>, vector<1x10xf32>
    %2 = vector.broadcast %1 : vector<1x10xf32> to vector<64x10xf32>
    %3 = arith.mulf %0, %2 : vector<64x10xf32>
    %cst = arith.constant dense<0.000000e+00> : vector<64xf32>
    %4 = vector.multi_reduction <add>, %3, %cst [1] : vector<64x10xf32> to vector<64xf32>
    %5 = vector.shape_cast %4 : vector<64xf32> to vector<64x1xf32>
    %c0_3 = arith.constant 0 : index
    %c0_4 = arith.constant 0 : index
    %6 = memref.load %arg2[%c0_3, %c0_4] : memref<1x1xf32, #tpu.memory_space<smem>>
    %7 = vector.broadcast %6 : f32 to vector<64x1xf32>
    %8 = arith.addf %5, %7 : vector<64x1xf32>
    %c0_5 = arith.constant 0 : index
    %c0_6 = arith.constant 0 : index
    %9 = vector.load %arg4[%c0_5, %c0_6] : memref<64x1xf32, #tpu.memory_space<vmem>>, vector<64x1xf32>
    tpu.vector_store %arg4[%c0_5, %c0_6], %8 {strides = array<i32>} : memref<64x1xf32, #tpu.memory_space<vmem>>, vector<64x1xf32>,
    return
  }
  func.func @transform_0(%arg0: i32) -> (i32, i32) {
    %c0_i32 = arith.constant 0 : i32
    %c0_i32_0 = arith.constant 0 : i32
    %c0_i32_1 = arith.constant 0 : i32
    return %c0_i32, %c0_i32_0 : i32, i32
  }
  func.func @transform_1(%arg0: i32) -> (i32, i32) {
    %c0_i32 = arith.constant 0 : i32
    %c0_i32_0 = arith.constant 0 : i32
    %c0_i32_1 = arith.constant 0 : i32
    return %c0_i32, %c0_i32_0 : i32, i32
  }
  func.func @transform_2(%arg0: i32) -> (i32, i32) {
    %c0_i32 = arith.constant 0 : i32
    %c0_i32_0 = arith.constant 0 : i32
    return %arg0, %c0_i32 : i32, i32
  }
  func.func @transform_3(%arg0: i32) -> (i32, i32) {
    %c0_i32 = arith.constant 0 : i32
    %c0_i32_0 = arith.constant 0 : i32
    return %arg0, %c0_i32 : i32, i32
  }
}

</mosaic_0001>

<bundles_post_ra>
// kernel: tpu_custom_call.1
= control target key start
LH: loop header
LB: loop body
LE: loop exit
PB: predicated region body
PF: predicated region fallthrough
CT: control target
= control target key end

     0   :  { %vm38_vm0 = vcmask 80896   ;;  %vm73_vm1 = vcmask 7168   ;;  %s177_s0 = inlined_call_operand.vmem [shape: f32[1,10], index: 0, kind: input, shape index: {}]   ;;  %s178_s2 = inlined_call_operand.vmem [shape: f32[64,10], index: 2, kind: input, shape index: {}]   ;;  %s179_s1 = inlined_call_operand.<no memory space> [shape: f32[1,1], index: 1, kind: input, shape index: {}]   ;;  %s180_s3 = inlined_call_operand.vmem [shape: f32[64,1], index: 3, kind: output, shape index: {}]  }
   0x1   :  { %v17_v0 = vld [vmem:[%s178_s2 + $0x10] sm:$0xff]  ;;  %v86_v1 = vld [vmem:[%s177_s0] ss:$0 sm:$0xff]  ;;  %v18_v5 = vld [vmem:[%s178_s2 + $0x18] sm:$0xff]  ;;  %v64_v25 = vstv %s179_s1 }
   0x2   :  { %v15_v2 = vld [vmem:[%s178_s2] sm:$0xff]  ;;  %v32_v3 = vmul.f32 %v86_v1, %v17_v0  ;;  %v16_v6 = vld [vmem:[%s178_s2 + $0x8] sm:$0xff]  ;;  %v33_v7 = vmul.f32 %v86_v1, %v18_v5  ;;  %v22_v17 = vld [vmem:[%s178_s2 + $0x38] sm:$0xff] }
   0x3   :  { %v30_v4 = vmul.f32 %v86_v1, %v15_v2  ;;  %v31_v8 = vmul.f32 %v86_v1, %v16_v6  ;;  %v20_v9 = vld [vmem:[%s178_s2 + $0x28] sm:$0xff]  ;;  %v19_v10 = vld [vmem:[%s178_s2 + $0x20] sm:$0xff]  ;;  %v21_v18 = vld [vmem:[%s178_s2 + $0x30] sm:$0xff]  ;;  %v37_v21 = vmul.f32 %v86_v1, %v22_v17 }
   0x4   :  { %v45_v11 = vsel %vm38_vm0, %v32_v3, 0.0  ;;  %v48_v13 = vsel %vm38_vm0, %v33_v7, 0.0  ;;  %v35_v15 = vmul.f32 %v86_v1, %v20_v9  ;;  %v34_v16 = vmul.f32 %v86_v1, %v19_v10 }
   0x5   :  { %v39_v12 = vsel %vm38_vm0, %v30_v4, 0.0  ;;  %46 = vadd.xlane.f32.xlu1 %v45_v11  ;;  %v42_v14 = vsel %vm38_vm0, %v31_v8, 0.0  ;;  %v36_v22 = vmul.f32 %v86_v1, %v21_v18  ;;  %v60_v23 = vsel %vm38_vm0, %v37_v21, 0.0 }
   0x6   :  { %40 = vadd.xlane.f32.xlu0 %v39_v12  ;;  %v54_v19 = vsel %vm38_vm0, %v35_v15, 0.0  ;;  %v51_v20 = vsel %vm38_vm0, %v34_v16, 0.0 }
   0x7   :  { %v57_v24 = vsel %vm38_vm0, %v36_v22, 0.0 }
   0x9   :  { %49 = vadd.xlane.f32.xlu1 %v48_v13 }
   0xa   :  { %43 = vadd.xlane.f32.xlu0 %v42_v14 }
   0xd   :  { %55 = vadd.xlane.f32.xlu1 %v54_v19 }
   0xe   :  { %52 = vadd.xlane.f32.xlu0 %v51_v20 }
  0x11   :  { %61 = vadd.xlane.f32.xlu1 %v60_v23 }
  0x12   :  { %58 = vadd.xlane.f32.xlu0 %v57_v24 }
  0x8e   :  { %v47_v26 = vpop.xlane.xlu1 %46 }
  0x8f   :  { %v41_v27 = vpop.xlane.xlu0 %40  ;;  %v67_v28 = vadd.f32 %v64_v25, %v47_v26 }
  0x90   :  { %v65_v29 = vadd.f32 %v64_v25, %v41_v27 }
  0x91   :  { %76 = vst.msk [vmem:[%s180_s3 + $0x10] sm:$0xff] %vm73_vm1, %v67_v28 }
  0x92   :  { %74 = vst.msk [vmem:[%s180_s3] sm:$0xff] %vm73_vm1, %v65_v29  ;;  %v50_v30 = vpop.xlane.xlu1 %49 }
  0x93   :  { %v44_v31 = vpop.xlane.xlu0 %43  ;;  %v68_v32 = vadd.f32 %v64_v25, %v50_v30 }
  0x94   :  { %v66_v33 = vadd.f32 %v64_v25, %v44_v31 }
  0x95   :  { %77 = vst.msk [vmem:[%s180_s3 + $0x18] sm:$0xff] %vm73_vm1, %v68_v32 }
  0x96   :  { %75 = vst.msk [vmem:[%s180_s3 + $0x8] sm:$0xff] %vm73_vm1, %v66_v33  ;;  %v56_v34 = vpop.xlane.xlu1 %55 }
  0x97   :  { %v53_v35 = vpop.xlane.xlu0 %52  ;;  %v70_v36 = vadd.f32 %v64_v25, %v56_v34 }
  0x98   :  { %v69_v37 = vadd.f32 %v64_v25, %v53_v35 }
  0x99   :  { %79 = vst.msk [vmem:[%s180_s3 + $0x28] sm:$0xff] %vm73_vm1, %v70_v36 }
  0x9a   :  { %78 = vst.msk [vmem:[%s180_s3 + $0x20] sm:$0xff] %vm73_vm1, %v69_v37  ;;  %v62_v38 = vpop.xlane.xlu1 %61 }
  0x9b   :  { %v59_v39 = vpop.xlane.xlu0 %58  ;;  %v72_v40 = vadd.f32 %v64_v25, %v62_v38 }
  0x9c   :  { %v71_v41 = vadd.f32 %v64_v25, %v59_v39 }
  0x9d   :  { %81 = vst.msk [vmem:[%s180_s3 + $0x38] sm:$0xff] %vm73_vm1, %v72_v40 }
  0x9e   :  { %80 = vst.msk [vmem:[%s180_s3 + $0x30] sm:$0xff] %vm73_vm1, %v71_v41 }

</bundles_post_ra>
